<compile_context>
chip_gen: v7x
topology: tpu7x:2x2x1
jax: 0.10.0
libtpu: 0.0.40
codegen_flags: <defaults>
</compile_context>

<pallas_src>
import math
import functools

import jax
import jax.numpy as jnp
from jax.experimental import pallas as pl
from jax.experimental.pallas import tpu as pltpu

HIDDEN = 256         # FCNetwork hidden width
TILE_B_MAX = 256     # batch rows per grid step


def _round_up(x, m):
    return ((x + m - 1) // m) * m


# --------------------------------- kernel ----------------------------------

def _fcnet_kernel(x_ref, w1_ref, b1_ref, w2_ref, b2_ref, w3_ref, b3_ref,
                  out_ref, *, gate):
    f32 = jnp.float32
    bf16 = jnp.bfloat16

    x = x_ref[...].astype(bf16)

    # fc1 -> relu
    h1 = jnp.dot(x, w1_ref[...], preferred_element_type=f32) + b1_ref[...]
    h1 = jnp.maximum(h1, 0.0)

    # fc2 -> relu
    h2 = jnp.dot(h1.astype(bf16), w2_ref[...], preferred_element_type=f32) + b2_ref[...]
    h2 = jnp.maximum(h2, 0.0)

    # fc3 (padded to a lane-dense 128*k-wide head; padded lanes have 0 weight/bias)
    y = jnp.dot(h2.astype(bf16), w3_ref[...], preferred_element_type=f32) + b3_ref[...]

    if gate == "tanh":
        y = jnp.tanh(y)          # tanh(0) = 0 on padded lanes -> harmless
    # gate == "none": identity (padded lanes stay 0)

    out_ref[...] = y


# --------------------------------- wrapper ----------------------------------

@functools.partial(jax.jit, static_argnames=("gate",))
def fcnetwork_forward(x, packed, gate="none"):
    """x: (B, state_size) f32.  packed: output of pack_params.  gate: "none" | "tanh"."""
    B, S = x.shape
    out_pad = packed["w3"].shape[1]          # lane-dense padded head width
    A = int(packed["action_size"].shape[0])  # real output width

    # Pad batch to a sublane multiple; tile it for large B (grid sharded across TCs).
    b8 = max(8, _round_up(B, 8))
    if b8 >= TILE_B_MAX:
        tile_b = TILE_B_MAX
        b_pad = _round_up(B, TILE_B_MAX)
    else:
        tile_b = b8
        b_pad = b8

    x_p = jnp.zeros((b_pad, S), jnp.float32).at[:B].set(x)

    row = lambda i: (i, 0)       # batch-tiled arrays
    const = lambda i: (0, 0)     # weights: VMEM-resident across grid steps

    kernel = functools.partial(_fcnet_kernel, gate=gate)
    out = pl.pallas_call(
        kernel,
        grid=(b_pad // tile_b,),
        out_shape=jax.ShapeDtypeStruct((b_pad, out_pad), jnp.float32),
        in_specs=[
            pl.BlockSpec((tile_b, S), row),
            pl.BlockSpec((S, HIDDEN), const),
            pl.BlockSpec((1, HIDDEN), const),
            pl.BlockSpec((HIDDEN, HIDDEN), const),
            pl.BlockSpec((1, HIDDEN), const),
            pl.BlockSpec((HIDDEN, out_pad), const),
            pl.BlockSpec((1, out_pad), const),
        ],
        out_specs=pl.BlockSpec((tile_b, out_pad), row),
        compiler_params=pltpu.CompilerParams(
            dimension_semantics=("parallel",)),
    )(x_p,
      packed["w1"], packed["b1"],
      packed["w2"], packed["b2"],
      packed["w3"], packed["b3"])

    return out[:B, :A]


# ----------------------------- parameter handling -----------------------------

def _init_linear(key, fan_in, fan_out):
    # Mimics nn.Linear default init: uniform(-1/sqrt(fan_in), +1/sqrt(fan_in)).
    kw, kb = jax.random.split(key)
    bound = 1.0 / math.sqrt(fan_in)
    w = jax.random.uniform(kw, (fan_in, fan_out), jnp.float32, -bound, bound)
    b = jax.random.uniform(kb, (1, fan_out), jnp.float32, -bound, bound)
    return w, b


def init_params(key, state_size, action_size):
    k1, k2, k3 = jax.random.split(key, 3)
    w1, b1 = _init_linear(k1, state_size, HIDDEN)
    w2, b2 = _init_linear(k2, HIDDEN, HIDDEN)
    w3, b3 = _init_linear(k3, HIDDEN, action_size)
    return dict(w1=w1, b1=b1, w2=w2, b2=b2, w3=w3, b3=b3)


def pack_params(params, action_size):
    """Pre-pack: cast MXU weights to bf16, pad the fc3 head to a 128*k lane slab."""
    A = action_size
    out_pad = max(128, _round_up(A, 128))
    bf16 = jnp.bfloat16
    w3 = jnp.zeros((HIDDEN, out_pad), jnp.float32).at[:, :A].set(params["w3"]).astype(bf16)
    b3 = jnp.zeros((1, out_pad), jnp.float32).at[:, :A].set(params["b3"])
    return dict(
        w1=params["w1"].astype(bf16), b1=params["b1"],
        w2=params["w2"].astype(bf16), b2=params["b2"],
        w3=w3, b3=b3,
        # static-shaped marker carrying the true output width through jit
        action_size=jnp.zeros((A,), jnp.float32))


# ------------------------------- reference path --------------------------------

def _reference_forward(x, p, gate):
    # Pure-JAX reference mirroring the kernel numerics (bf16 weights/activations
    # into the matmuls, f32 accumulation).
    bf16 = jnp.bfloat16
    f32 = jnp.float32

    def lin(h, w, b):
        return jnp.dot(h.astype(bf16), w.astype(bf16),
                       preferred_element_type=f32) + b

    h = jnp.maximum(lin(x, p["w1"], p["b1"]), 0.0)
    h = jnp.maximum(lin(h, p["w2"], p["b2"]), 0.0)
    y = lin(h, p["w3"], p["b3"])
    if gate == "tanh":
        y = jnp.tanh(y)
    return y


if __name__ == "__main__":
    B, S, A = 2, 16, 4
    key = jax.random.PRNGKey(0)
    k_actor, k_critic, k_state = jax.random.split(key, 3)

    state = jax.random.normal(k_state, (B, S), jnp.float32)

    # Actor-style instance: output_gate = tanh
    actor_params = init_params(k_actor, S, A)
    actor_packed = pack_params(actor_params, A)
    actor_out = fcnetwork_forward(state, actor_packed, gate="tanh")

    # Critic-style instance: output_gate = None, action_size = 1
    critic_params = init_params(k_critic, S, 1)
    critic_packed = pack_params(critic_params, 1)
    critic_out = fcnetwork_forward(state, critic_packed, gate="none")

    jax.block_until_ready((actor_out, critic_out))

    ref_actor = _reference_forward(state, actor_params, "tanh")
    ref_critic = _reference_forward(state, critic_params, "none")

    assert actor_out.shape == (B, A)
    assert critic_out.shape == (B, 1)
    assert jnp.allclose(actor_out, ref_actor, atol=2e-2, rtol=2e-2)
    assert jnp.allclose(critic_out, ref_critic, atol=2e-2, rtol=2e-2)

    print("KERNEL_OK")
</pallas_src>

<mosaic_0001>
module attributes {stable_mosaic.version = 11 : i64} {
  func.func @_fcnet_kernel(%arg0: i32, %arg1: memref<8x16xf32, #tpu.memory_space<vmem>>, %arg2: memref<16x256xbf16, #tpu.memory_space<vmem>>, %arg3: memref<1x256xf32, #tpu.memory_space<vmem>>, %arg4: memref<256x256xbf16, #tpu.memory_space<vmem>>, %arg5: memref<1x256xf32, #tpu.memory_space<vmem>>, %arg6: memref<256x128xbf16, #tpu.memory_space<vmem>>, %arg7: memref<1x128xf32, #tpu.memory_space<vmem>>, %arg8: memref<8x128xf32, #tpu.memory_space<vmem>>) attributes {dimension_semantics = [#tpu.dimension_semantics<parallel>], iteration_bounds = array<i64: 1>, scalar_prefetch = 0 : i64, scratch_operands = 0 : i64, tpu.core_type = #tpu.core_type<tc>, window_params = [{transform_indices = @transform_0, window_bounds = array<i64: 8, 16>}, {pipeline_mode = #tpu.pipeline_mode<synchronous>, transform_indices = @transform_1, window_bounds = array<i64: 16, 256>}, {pipeline_mode = #tpu.pipeline_mode<synchronous>, transform_indices = @transform_2, window_bounds = array<i64: 1, 256>}, {pipeline_mode = #tpu.pipeline_mode<synchronous>, transform_indices = @transform_3, window_bounds = array<i64: 256, 256>}, {pipeline_mode = #tpu.pipeline_mode<synchronous>, transform_indices = @transform_4, window_bounds = array<i64: 1, 256>}, {pipeline_mode = #tpu.pipeline_mode<synchronous>, transform_indices = @transform_5, window_bounds = array<i64: 256, 128>}, {pipeline_mode = #tpu.pipeline_mode<synchronous>, transform_indices = @transform_6, window_bounds = array<i64: 1, 128>}, {transform_indices = @transform_7, window_bounds = array<i64: 8, 128>}]} {
    %c0 = arith.constant 0 : index
    %c0_0 = arith.constant 0 : index
    %0 = vector.load %arg1[%c0, %c0_0] : memref<8x16xf32, #tpu.memory_space<vmem>>, vector<8x16xf32>
    %1 = arith.truncf %0 : vector<8x16xf32> to vector<8x16xbf16>
    %c0_1 = arith.constant 0 : index
    %c0_2 = arith.constant 0 : index
    %2 = vector.load %arg2[%c0_1, %c0_2] : memref<16x256xbf16, #tpu.memory_space<vmem>>, vector<16x256xbf16>
    %cst = arith.constant dense<0.000000e+00> : vector<8x256xf32>
    %3 = tpu.matmul %1, %2, %cst {dimension_numbers = #tpu.dot_dimension_numbers<[1], [0], [0], [1], [0, 0, 1, 1], [], []>} : vector<8x16xbf16>, vector<16x256xbf16>, vector<8x256xf32> -> vector<8x256xf32>
    %c0_3 = arith.constant 0 : index
    %c0_4 = arith.constant 0 : index
    %4 = vector.load %arg3[%c0_3, %c0_4] : memref<1x256xf32, #tpu.memory_space<vmem>>, vector<1x256xf32>
    %5 = vector.broadcast %4 : vector<1x256xf32> to vector<8x256xf32>
    %6 = arith.addf %3, %5 : vector<8x256xf32>
    %cst_5 = arith.constant 0.000000e+00 : f32
    %7 = vector.broadcast %cst_5 : f32 to vector<8x256xf32>
    %8 = arith.maximumf %6, %7 : vector<8x256xf32>
    %9 = arith.truncf %8 : vector<8x256xf32> to vector<8x256xbf16>
    %c0_6 = arith.constant 0 : index
    %c0_7 = arith.constant 0 : index
    %10 = vector.load %arg4[%c0_6, %c0_7] : memref<256x256xbf16, #tpu.memory_space<vmem>>, vector<256x256xbf16>
    %cst_8 = arith.constant dense<0.000000e+00> : vector<8x256xf32>
    %11 = tpu.matmul %9, %10, %cst_8 {dimension_numbers = #tpu.dot_dimension_numbers<[1], [0], [0], [1], [0, 0, 1, 1], [], []>} : vector<8x256xbf16>, vector<256x256xbf16>, vector<8x256xf32> -> vector<8x256xf32>
    %c0_9 = arith.constant 0 : index
    %c0_10 = arith.constant 0 : index
    %12 = vector.load %arg5[%c0_9, %c0_10] : memref<1x256xf32, #tpu.memory_space<vmem>>, vector<1x256xf32>
    %13 = vector.broadcast %12 : vector<1x256xf32> to vector<8x256xf32>
    %14 = arith.addf %11, %13 : vector<8x256xf32>
    %cst_11 = arith.constant 0.000000e+00 : f32
    %15 = vector.broadcast %cst_11 : f32 to vector<8x256xf32>
    %16 = arith.maximumf %14, %15 : vector<8x256xf32>
    %17 = arith.truncf %16 : vector<8x256xf32> to vector<8x256xbf16>
    %c0_12 = arith.constant 0 : index
    %c0_13 = arith.constant 0 : index
    %18 = vector.load %arg6[%c0_12, %c0_13] : memref<256x128xbf16, #tpu.memory_space<vmem>>, vector<256x128xbf16>
    %cst_14 = arith.constant dense<0.000000e+00> : vector<8x128xf32>
    %19 = tpu.matmul %17, %18, %cst_14 {dimension_numbers = #tpu.dot_dimension_numbers<[1], [0], [0], [1], [0, 0, 1, 1], [], []>} : vector<8x256xbf16>, vector<256x128xbf16>, vector<8x128xf32> -> vector<8x128xf32>
    %c0_15 = arith.constant 0 : index
    %c0_16 = arith.constant 0 : index
    %20 = vector.load %arg7[%c0_15, %c0_16] : memref<1x128xf32, #tpu.memory_space<vmem>>, vector<1x128xf32>
    %21 = vector.broadcast %20 : vector<1x128xf32> to vector<8x128xf32>
    %22 = arith.addf %19, %21 : vector<8x128xf32>
    %23 = math.tanh %22 : vector<8x128xf32>
    %c0_17 = arith.constant 0 : index
    %c0_18 = arith.constant 0 : index
    %24 = vector.load %arg8[%c0_17, %c0_18] : memref<8x128xf32, #tpu.memory_space<vmem>>, vector<8x128xf32>
    tpu.vector_store %arg8[%c0_17, %c0_18], %23 {strides = array<i32>} : memref<8x128xf32, #tpu.memory_space<vmem>>, vector<8x128xf32>,
    return
  }
  func.func @transform_0(%arg0: i32) -> (i32, i32) {
    %c0_i32 = arith.constant 0 : i32
    %c0_i32_0 = arith.constant 0 : i32
    return %arg0, %c0_i32 : i32, i32
  }
  func.func @transform_1(%arg0: i32) -> (i32, i32) {
    %c0_i32 = arith.constant 0 : i32
    %c0_i32_0 = arith.constant 0 : i32
    %c0_i32_1 = arith.constant 0 : i32
    return %c0_i32, %c0_i32_0 : i32, i32
  }
  func.func @transform_2(%arg0: i32) -> (i32, i32) {
    %c0_i32 = arith.constant 0 : i32
    %c0_i32_0 = arith.constant 0 : i32
    %c0_i32_1 = arith.constant 0 : i32
    return %c0_i32, %c0_i32_0 : i32, i32
  }
  func.func @transform_3(%arg0: i32) -> (i32, i32) {
    %c0_i32 = arith.constant 0 : i32
    %c0_i32_0 = arith.constant 0 : i32
    %c0_i32_1 = arith.constant 0 : i32
    return %c0_i32, %c0_i32_0 : i32, i32
  }
  func.func @transform_4(%arg0: i32) -> (i32, i32) {
    %c0_i32 = arith.constant 0 : i32
    %c0_i32_0 = arith.constant 0 : i32
    %c0_i32_1 = arith.constant 0 : i32
    return %c0_i32, %c0_i32_0 : i32, i32
  }
  func.func @transform_5(%arg0: i32) -> (i32, i32) {
    %c0_i32 = arith.constant 0 : i32
    %c0_i32_0 = arith.constant 0 : i32
    %c0_i32_1 = arith.constant 0 : i32
    return %c0_i32, %c0_i32_0 : i32, i32
  }
  func.func @transform_6(%arg0: i32) -> (i32, i32) {
    %c0_i32 = arith.constant 0 : i32
    %c0_i32_0 = arith.constant 0 : i32
    %c0_i32_1 = arith.constant 0 : i32
    return %c0_i32, %c0_i32_0 : i32, i32
  }
  func.func @transform_7(%arg0: i32) -> (i32, i32) {
    %c0_i32 = arith.constant 0 : i32
    %c0_i32_0 = arith.constant 0 : i32
    return %arg0, %c0_i32 : i32, i32
  }
}

</mosaic_0001>

<bundles_post_ra>
// kernel: fcnetwork_forward.1
= control target key start
LH: loop header
LB: loop body
LE: loop exit
PB: predicated region body
PF: predicated region fallthrough
CT: control target
= control target key end

     0   :  { %12 = vsyncpa [#allocation3], 0  ;;  %s852_s0 = inlined_call_operand.vmem [shape: f32[8,16], index: 0, kind: input, shape index: {}]   ;;  %s853_s1 = inlined_call_operand.vmem [shape: bf16[16,256], index: 1, kind: input, shape index: {}]   ;;  %s854_s2 = inlined_call_operand.vmem [shape: f32[1,256], index: 2, kind: input, shape index: {}]   ;;  %s855_s3 = inlined_call_operand.hbm [shape: bf16[256,256], index: 3, kind: input, shape index: {}]   ;;  %s856_s4 = inlined_call_operand.vmem [shape: f32[1,256], index: 4, kind: input, shape index: {}]   ;;  %s857_s5 = inlined_call_operand.hbm [shape: bf16[256,128], index: 5, kind: input, shape index: {}]   ;;  %s858_s6 = inlined_call_operand.vmem [shape: f32[1,128], index: 6, kind: input, shape index: {}]   ;;  %s859_s7 = inlined_call_operand.vmem [shape: f32[8,128], index: 7, kind: output, shape index: {}]  }
   0x1   :  { %13 = vsyncpa [#allocation5], 0  ;;  %s760_s24 = smov [#allocation2]   ;;  %s712_s28 = scalar_lea.hbm %s855_s3, 4096 }
   0x2   :  { %s25_s25 = sshll.u32 %s760_s24, 4  ;;  %p713_p0 = scmp.ne.s32.totalorder %s855_s3, %s712_s28  ;;  %s26_s25 = int_to_ptr.vmem [resolvable:$true] %s25_s25 }
   0x3   :  { %p716_p1 = scmp.lt.u32.totalorder %s712_s28, %s855_s3 }
   0x5   :  { %p718_p2 = pnand %p716_p1, %p713_p0 }
   0x7   :  { %721 = shalt.err (!%p718_p2)
}
   0x8   :  { %s722_s10 = scalar_lea.vmem %s26_s25, 4096  ;;  %p727_p4 = scmp.lt.s32.totalorder %s26_s25, %s26_s25 }
   0x9   :  { %p723_p3 = scmp.ne.s32.totalorder %s26_s25, %s722_s10  ;;  %p728_p5 = scmp.lt.s32.totalorder %s722_s10, %s722_s10 }
   0xb   :  { %p729_p6 = por %p728_p5, %p727_p4 }
   0xd   :  { %p730_p7 = pnand %p729_p6, %p723_p3 }
   0xf   :  { %733 = shalt.err (!%p730_p7)
}
  0x10   :  { %s761_s11 = smov 128   ;;  %s762_s12 = smov 8  }
  0x11   :  { %31 = dma.hbm_to_vmem [thread:$0]  %s855_s3, 4096, %s26_s25, [#allocation3], %s761_s11, %s761_s11, %s762_s12  }
  0x12   :  { %s763_s15 = smov [#allocation4]   ;;  %s734_s19 = scalar_lea.hbm %s857_s5, 2048 }
  0x13   :  { %s39_s16 = sshll.u32 %s763_s15, 4  ;;  %p735_p8 = scmp.ne.s32.totalorder %s857_s5, %s734_s19  ;;  %s40_s16 = int_to_ptr.vmem [resolvable:$true] %s39_s16 }
  0x14   :  { %p738_p9 = scmp.lt.u32.totalorder %s734_s19, %s857_s5 }
  0x16   :  { %p740_p10 = pnand %p738_p9, %p735_p8 }
  0x18   :  { %743 = shalt.err (!%p740_p10)
}
  0x19   :  { %s744_s24 = scalar_lea.vmem %s40_s16, 2048  ;;  %p749_p12 = scmp.lt.s32.totalorder %s40_s16, %s40_s16 }
  0x1a   :  { %p745_p11 = scmp.ne.s32.totalorder %s40_s16, %s744_s24  ;;  %p750_p13 = scmp.lt.s32.totalorder %s744_s24, %s744_s24 }
  0x1c   :  { %p751_p0 = por %p750_p13, %p749_p12 }
  0x1e   :  { %p752_p1 = pnand %p751_p0, %p745_p11 }
  0x20   :  { %755 = shalt.err (!%p752_p1)
}
  0x21   :  { %s764_s3 = smov 64   ;;  %s765_s25 = smov 4  }
  0x22   :  { %45 = dma.hbm_to_vmem [thread:$0]  %s857_s5, 2048, %s40_s16, [#allocation5], %s764_s3, %s764_s3, %s765_s25  }
  0x23   :  { %756 = dma.done.wait [#allocation3], 4096  }
  0x24   :  { %757 = vsyncadd [#allocation3], 4294963200 }
  0x25   :  { %758 = dma.done.wait [#allocation5], 2048  }
  0x26   :  { %759 = vsyncadd [#allocation5], 4294965248  ;;  %v766_v0 = vmov 0   ;;  %v643_v1 = vld [vmem:[%s853_s1 + $0x4] ss:$8 sps:$4 sm:$0xff]   ;;  %vm81_vm0 = vcmask 130048   ;;  %v61_v49 = vlaneseq }
  0x27   :  { %117 = vmatprep.mubr.bf16.mxu0 %v766_v0  ;;  %v645_v2 = vld [vmem:[%s853_s1] ss:$8 sps:$4 sm:$0xff]   ;;  %85 = vmatprep.subr.bf16.mxu0 %v643_v1  ;;  %v646_v5 = vld [vmem:[#allocation2 + $0x4] ss:$8 sps:$4 sm:$0xff]   ;;  %v648_v6 = vld [vmem:[#allocation2] ss:$8 sps:$4 sm:$0xff]  }
  0x28   :  { %v55_v3 = vld [vmem:[%s852_s0] sm:$0xff]  ;;  %86 = vmatpush1.bf16.msra.mxu0 %v645_v2  ;;  %334 = vmatprep.subr.bf16.mxu1 %v646_v5  ;;  %v652_v9 = vld [vmem:[#allocation2 + $0x24] ss:$8 sps:$4 sm:$0xff]   ;;  %v654_v10 = vld [vmem:[#allocation2 + $0x20] ss:$8 sps:$4 sm:$0xff]   ;;  %v62_v50 = vshrl.u32 %v61_v49, 7 }
  0x29   :  { %v56_v4 = vpack.c.bf16 %v55_v3, %v55_v3  ;;  %v649_v7 = vld [vmem:[#allocation2 + $0x14] ss:$8 sps:$4 sm:$0xff]   ;;  %335 = vmatpush1.bf16.msra.mxu1 %v648_v6  ;;  %v651_v8 = vld [vmem:[#allocation2 + $0x10] ss:$8 sps:$4 sm:$0xff]   ;;  %v658_v13 = vld [vmem:[#allocation2 + $0x44] ss:$8 sps:$4 sm:$0xff]  }
  0x2a   :  { %336 = vmatprep.subr.bf16.mxu1 %v649_v7  ;;  %v655_v11 = vld [vmem:[#allocation2 + $0x34] ss:$8 sps:$4 sm:$0xff]   ;;  %v657_v12 = vld [vmem:[#allocation2 + $0x30] ss:$8 sps:$4 sm:$0xff]   ;;  %v660_v14 = vld [vmem:[#allocation2 + $0x40] ss:$8 sps:$4 sm:$0xff]  }
  0x2b   :  { %564 = vmatmul.mubr.msk.bf16.vlgmr.msra.gmra.mrb[0].mxu0 %vm81_vm0, %v56_v4  ;;  %v661_v15 = vld [vmem:[#allocation2 + $0x54] ss:$8 sps:$4 sm:$0xff]   ;;  %v663_v16 = vld [vmem:[#allocation2 + $0x50] ss:$8 sps:$4 sm:$0xff]   ;;  %v664_v17 = vld [vmem:[#allocation2 + $0x64] ss:$8 sps:$4 sm:$0xff]  }
  0x2c   :  { %v666_v18 = vld [vmem:[#allocation2 + $0x60] ss:$8 sps:$4 sm:$0xff]   ;;  %v667_v19 = vld [vmem:[#allocation2 + $0x74] ss:$8 sps:$4 sm:$0xff]   ;;  %v669_v20 = vld [vmem:[#allocation2 + $0x70] ss:$8 sps:$4 sm:$0xff]  }
  0x2d   :  { %337 = vmatpush1.bf16.msra.mxu1 %v651_v8  ;;  %v670_v21 = vld [vmem:[#allocation2 + $0x84] ss:$8 sps:$4 sm:$0xff]   ;;  %v672_v22 = vld [vmem:[#allocation2 + $0x80] ss:$8 sps:$4 sm:$0xff]   ;;  %v673_v23 = vld [vmem:[#allocation2 + $0x94] ss:$8 sps:$4 sm:$0xff]  }
  0x2e   :  { %338 = vmatprep.subr.bf16.mxu1 %v652_v9  ;;  %v675_v24 = vld [vmem:[#allocation2 + $0x90] ss:$8 sps:$4 sm:$0xff]   ;;  %v676_v25 = vld [vmem:[#allocation2 + $0xa4] ss:$8 sps:$4 sm:$0xff]   ;;  %v678_v26 = vld [vmem:[#allocation2 + $0xa0] ss:$8 sps:$4 sm:$0xff]  }
  0x2f   :  { %v679_v27 = vld [vmem:[#allocation2 + $0xb4] ss:$8 sps:$4 sm:$0xff]   ;;  %v681_v28 = vld [vmem:[#allocation2 + $0xb0] ss:$8 sps:$4 sm:$0xff]   ;;  %v682_v29 = vld [vmem:[#allocation2 + $0xc4] ss:$8 sps:$4 sm:$0xff]  }
  0x30   :  { %v684_v30 = vld [vmem:[#allocation2 + $0xc0] ss:$8 sps:$4 sm:$0xff]   ;;  %v685_v31 = vld [vmem:[#allocation2 + $0xd4] ss:$8 sps:$4 sm:$0xff]   ;;  %v687_v32 = vld [vmem:[#allocation2 + $0xd0] ss:$8 sps:$4 sm:$0xff]  }
  0x31   :  { %339 = vmatpush1.bf16.msra.mxu1 %v654_v10  ;;  %v688_v33 = vld [vmem:[#allocation2 + $0xe4] ss:$8 sps:$4 sm:$0xff]   ;;  %v690_v34 = vld [vmem:[#allocation2 + $0xe0] ss:$8 sps:$4 sm:$0xff]   ;;  %v691_v35 = vld [vmem:[#allocation2 + $0xf4] ss:$8 sps:$4 sm:$0xff]  }
  0x32   :  { %340 = vmatprep.subr.bf16.mxu1 %v655_v11  ;;  %v693_v36 = vld [vmem:[#allocation2 + $0xf0] ss:$8 sps:$4 sm:$0xff]   ;;  %v694_v37 = vld [vmem:[#allocation4 + $0x40] sm:$0xff]   ;;  %v696_v39 = vld [vmem:[#allocation4 + $0x48] sm:$0xff]   ;;  %v63_v51 = vsub.s32 0, %v62_v50  ;;  %v67_v53 = vsub.s32 1, %v62_v50 }
  0x33   :  { %v695_v38 = vld [vmem:[#allocation4] sm:$0xff]   ;;  %614 = vmatprep.subr.bf16.mxu0 %v694_v37  ;;  %v697_v40 = vld [vmem:[#allocation4 + $0x8] sm:$0xff]   ;;  %v698_v41 = vld [vmem:[#allocation4 + $0x50] sm:$0xff]  }
  0x34   :  { %615 = vmatpush3.bf16.msra.mxu0 %v695_v38  ;;  %v699_v42 = vld [vmem:[#allocation4 + $0x10] sm:$0xff]   ;;  %v700_v43 = vld [vmem:[#allocation4 + $0x58] sm:$0xff]   ;;  %v702_v45 = vld [vmem:[#allocation4 + $0x60] sm:$0xff]  }
  0x35   :  { %341 = vmatpush1.bf16.msra.mxu1 %v657_v12  ;;  %616 = vmatprep.subr.bf16.mxu0 %v696_v39  ;;  %v701_v44 = vld [vmem:[#allocation4 + $0x18] sm:$0xff]   ;;  %v703_v46 = vld [vmem:[#allocation4 + $0x20] sm:$0xff]   ;;  %v704_v47 = vld [vmem:[#allocation4 + $0x68] sm:$0xff]  }
  0x36   :  { %342 = vmatprep.subr.bf16.mxu1 %v658_v13  ;;  %v705_v48 = vld [vmem:[#allocation4 + $0x28] sm:$0xff]   ;;  %v59_v52 = vld [vmem:[%s854_s2] sm:$0x3]  ;;  %v708_v4 = vld [vmem:[#allocation4 + $0x78] sm:$0xff]  }
  0x37   :  { %v64_v54 = vrot.slane %v59_v52, %v63_v51  ;;  %v68_v55 = vrot.slane %v59_v52, %v67_v53  ;;  %v706_v2 = vld [vmem:[#allocation4 + $0x70] sm:$0xff]   ;;  %v709_v5 = vld [vmem:[#allocation4 + $0x38] sm:$0xff]  }
  0x38   :  { %617 = vmatpush3.bf16.msra.mxu0 %v697_v40  ;;  %v707_v3 = vld [vmem:[#allocation4 + $0x30] sm:$0xff]  }
  0x39   :  { %343 = vmatpush1.bf16.msra.mxu1 %v660_v14  ;;  %618 = vmatprep.subr.bf16.mxu0 %v698_v41  ;;  %v162_v6 = vld [vmem:[%s856_s4] sm:$0x3] }
  0x3a   :  { %344 = vmatprep.subr.bf16.mxu1 %v661_v15  ;;  %v167_v7 = vrot.slane %v162_v6, %v63_v51  ;;  %v171_v8 = vrot.slane %v162_v6, %v67_v53 }
  0x3c   :  { %619 = vmatpush3.bf16.msra.mxu0 %v699_v42 }
  0x3d   :  { %345 = vmatpush1.bf16.msra.mxu1 %v663_v16  ;;  %620 = vmatprep.subr.bf16.mxu0 %v700_v43 }
  0x3e   :  { %346 = vmatprep.subr.bf16.mxu1 %v664_v17 }
  0x40   :  { %621 = vmatpush3.bf16.msra.mxu0 %v701_v44 }
  0x41   :  { %347 = vmatpush1.bf16.msra.mxu1 %v666_v18  ;;  %622 = vmatprep.subr.bf16.mxu0 %v702_v45 }
  0x42   :  { %348 = vmatprep.subr.bf16.mxu1 %v667_v19 }
  0x44   :  { %623 = vmatpush3.bf16.msra.mxu0 %v703_v46 }
  0x45   :  { %349 = vmatpush1.bf16.msra.mxu1 %v669_v20  ;;  %624 = vmatprep.subr.bf16.mxu0 %v704_v47  ;;  %v597_v20 = vld [vmem:[%s858_s6] ss:$0 sm:$0xff] }
  0x46   :  { %350 = vmatprep.subr.bf16.mxu1 %v670_v21 }
  0x48   :  { %625 = vmatpush3.bf16.msra.mxu0 %v705_v48 }
  0x49   :  { %351 = vmatpush1.bf16.msra.mxu1 %v672_v22  ;;  %626 = vmatprep.subr.bf16.mxu0 %v706_v2 }
  0x4a   :  { %352 = vmatprep.subr.bf16.mxu1 %v673_v23 }
  0x4c   :  { %627 = vmatpush3.bf16.msra.mxu0 %v707_v3 }
  0x4d   :  { %353 = vmatpush1.bf16.msra.mxu1 %v675_v24  ;;  %628 = vmatprep.subr.bf16.mxu0 %v708_v4 }
  0x4e   :  { %354 = vmatprep.subr.bf16.mxu1 %v676_v25 }
  0x50   :  { %629 = vmatpush3.bf16.msra.mxu0 %v709_v5 }
  0x51   :  { %355 = vmatpush1.bf16.msra.mxu1 %v678_v26 }
  0x52   :  { %356 = vmatprep.subr.bf16.mxu1 %v679_v27 }
  0x55   :  { %357 = vmatpush1.bf16.msra.mxu1 %v681_v28 }
  0x56   :  { %358 = vmatprep.subr.bf16.mxu1 %v682_v29 }
  0x59   :  { %359 = vmatpush1.bf16.msra.mxu1 %v684_v30 }
  0x5a   :  { %360 = vmatprep.subr.bf16.mxu1 %v685_v31 }
  0x5d   :  { %361 = vmatpush1.bf16.msra.mxu1 %v687_v32 }
  0x5e   :  { %362 = vmatprep.subr.bf16.mxu1 %v688_v33 }
  0x61   :  { %363 = vmatpush1.bf16.msra.mxu1 %v690_v34 }
  0x62   :  { %364 = vmatprep.subr.bf16.mxu1 %v691_v35 }
  0x65   :  { %365 = vmatpush1.bf16.msra.mxu1 %v693_v36 }
  0xfe   :  { %v119_v56 = vpop.f32.mrb[0].mxu0 }
  0xff   :  { %v120_v57 = vadd.f32 %v119_v56, %v64_v54  ;;  %v121_v58 = vpop.f32.mrb[1].mxu0 }
 0x100   :  { %v122_v59 = vadd.f32 %v121_v58, %v68_v55  ;;  %v123_v60 = vpop.f32.mrb[2].mxu0 }
 0x101   :  { %v126_v61 = vmax.f32 %v120_v57, 0.0  ;;  %v124_v62 = vpop.f32.mrb[3].mxu0 }
 0x102   :  { %v127_v63 = vmax.f32 %v122_v59, 0.0 }
 0x103   :  { %v128_v1 = vpack.c.bf16 %v126_v61, %v126_v61 }
 0x104   :  { %v129_v0 = vpack.c.bf16 %v127_v63, %v127_v63 }
 0x106   :  { %366 = vmatprep.mubr.bf16.mxu1 %v129_v0 }
 0x107   :  { %367 = vmatmul.mubr.bf16.vlgmr.msra.gmra.mrb[0].mxu1 %v128_v1 }
 0x1da   :  { %v368_v9 = vpop.f32.mrb[0].mxu1 }
 0x1db   :  { %v369_v10 = vadd.f32 %v368_v9, %v167_v7  ;;  %v370_v11 = vpop.f32.mrb[1].mxu1 }
 0x1dc   :  { %v371_v12 = vadd.f32 %v370_v11, %v171_v8  ;;  %v372_v13 = vpop.f32.mrb[2].mxu1 }
 0x1dd   :  { %v375_v14 = vmax.f32 %v369_v10, 0.0  ;;  %v373_v15 = vpop.f32.mrb[3].mxu1 }
 0x1de   :  { %v376_v16 = vmax.f32 %v371_v12, 0.0 }
 0x1df   :  { %v377_v18 = vpack.c.bf16 %v375_v14, %v375_v14 }
 0x1e0   :  { %v378_v17 = vpack.c.bf16 %v376_v16, %v376_v16 }
 0x1e2   :  { %546 = vmatprep.mubr.bf16.mxu0 %v378_v17 }
 0x1e3   :  { %547 = vmatmul.mubr.bf16.vlgmr.msra.gmra.mrb[4].mxu0 %v377_v18 }
 0x2b6   :  { %v630_v19 = vpop.f32.mrb[4].mxu0 }
 0x2b7   :  { %v631_v21 = vpop.f32.mrb[5].mxu0 }
 0x2b8   :  { %v632_v22 = vadd.f32 %v631_v21, %v630_v19  ;;  %v633_v23 = vpop.f32.mrb[6].mxu0 }
 0x2b9   :  { %v634_v24 = vpop.f32.mrb[7].mxu0 }
 0x2ba   :  { %v549_v25 = vadd.f32 %v632_v22, %v597_v20 }
 0x2bc   :  { %710 = vtanh.f32 %v549_v25 }
 0x2c6   :  { %v711_v26 = vpop.eup %710 }
 0x2c7   :  { %555 = vst [vmem:[%s859_s7] sm:$0xff] %v711_v26 }
 0x2c8   :  { %560 = vsyncpa [#allocation3], 1 }
 0x2c9   :  { %561 = vsyncpa [#allocation5], 1 }

</bundles_post_ra>
